<compile_context>
chip_gen: v7x
topology: tpu7x:2x2x1
jax: 0.10.0
libtpu: 0.0.40
codegen_flags: <defaults>
</compile_context>

<pallas_src>
import functools

import jax
import jax.numpy as jnp
from jax.experimental import pallas as pl
from jax.experimental.pallas import tpu as pltpu

_LANES = 128
_MAX_BLOCK_ROWS = 4096   # (4096, 128) f32 tile = 2 MiB per input buffer
_ROW_ALIGN = 32          # keeps (32,128) int8 tiling + 4 independent acc chains
_ACC_ROWS = 32           # accumulator rows = 4 x (8,128) vregs


def _round_up(a, m):
    return -(-a // m) * m


def _dice_partial_kernel(x_ref, t_ref, pt_ref, s_ref, *,
                         valid_rows, block_rows, num_k):
    """Accumulate per-lane partial sums of p*t and (p + t) for one core's slice.

    pt_ref / s_ref blocks are (1, 32, 128) f32 and stay resident in VMEM across
    the inner ("arbitrary") grid axis, acting as accumulators.
    """
    i = pl.program_id(0)
    k = pl.program_id(1)

    @pl.when(k == 0)
    def _():
        pt_ref[...] = jnp.zeros_like(pt_ref)
        s_ref[...] = jnp.zeros_like(s_ref)

    # Logical (unclamped) first row of this block.  Rows at or beyond
    # `valid_rows` (partial boundary block / duplicated trailing block) carry
    # unspecified data and are masked out.
    row0 = (i * num_k + k) * block_rows
    row_ids = jax.lax.broadcasted_iota(jnp.int32, (block_rows, _LANES), 0)
    mask = row_ids < (valid_rows - row0)

    x = x_ref[...].astype(jnp.float32)
    t = t_ref[...].astype(jnp.float32)
    p = jnp.where(mask, jax.nn.sigmoid(x), 0.0)
    t = jnp.where(mask, t, 0.0)

    # Fold the (block_rows, 128) tile into (block_rows//32, 32, 128) and reduce
    # the leading axis: pure element-wise vreg adds on the VPU, split across 4
    # independent (8,128) accumulation chains (no cross-lane XLU work).
    folds = block_rows // _ACC_ROWS
    pt = (p * t).reshape(folds, _ACC_ROWS, _LANES).sum(axis=0)
    s = (p + t).reshape(folds, _ACC_ROWS, _LANES).sum(axis=0)

    pt_ref[...] += pt[None]
    s_ref[...] += s[None]


def dice_loss(inputs, targets, smooth=1.0):
    """Pallas implementation of DiceLoss.forward (inputs are raw logits)."""
    n = inputs.size
    x = jnp.ravel(inputs)
    t = jnp.ravel(targets)

    # Pallas TPU has no f64; bool targets stream as int8 (converted in-kernel).
    if x.dtype == jnp.float64:
        x = x.astype(jnp.float32)
    if t.dtype == jnp.float64:
        t = t.astype(jnp.float32)
    if x.dtype == jnp.bool_:
        x = x.astype(jnp.float32)
    if t.dtype == jnp.bool_:
        t = t.astype(jnp.int8)

    smooth = jnp.float32(smooth)
    intersection = jnp.float32(0.0)
    total = jnp.float32(0.0)

    rows = n // _LANES           # full 128-lane rows handled by the kernel
    n_main = rows * _LANES
    n_rem = n - n_main           # < 128 elements, handled in plain JAX

    if rows > 0:
        # Main part: streamed through the kernel with no full-array pad/copy.
        x_main = x if n_main == n else x[:n_main]
        t_main = t if n_main == n else t[:n_main]
        x2 = x_main.reshape(rows, _LANES)
        t2 = t_main.reshape(rows, _LANES)

        arr_rows = rows
        if rows < _ROW_ALIGN:
            # Tiny input: pad a few KiB so the single block keeps the 32-row
            # alignment; the padded rows are masked out inside the kernel.
            arr_rows = _ROW_ALIGN
            x2 = jnp.pad(x2, ((0, arr_rows - rows), (0, 0)))
            t2 = jnp.pad(t2, ((0, arr_rows - rows), (0, 0)))

        # Block sizing: big blocks (HBM streaming bound) and >= 2 blocks
        # whenever possible so the leading "parallel" axis shards the stream
        # across the two TensorCores of a v7x megacore (no-op on v5e/v6e).
        block_rows = min(_MAX_BLOCK_ROWS,
                         _round_up(pl.cdiv(arr_rows, 2), _ROW_ALIGN))
        num_blocks = pl.cdiv(arr_rows, block_rows)
        n_split = 2 if num_blocks >= 2 else 1
        num_k = pl.cdiv(num_blocks, n_split)
        last_block = num_blocks - 1

        def idx_map(i, k):
            # Clamp so a possible extra trailing block re-reads the last valid
            # block (in-bounds DMA) instead of going OOB; its contribution is
            # zeroed in the kernel via the unclamped logical row index.
            return (jnp.minimum(i * num_k + k, last_block), 0)

        in_blk_x = pl.BlockSpec((block_rows, _LANES), idx_map)
        in_blk_t = pl.BlockSpec((block_rows, _LANES), idx_map)
        out_blk = pl.BlockSpec((1, _ACC_ROWS, _LANES), lambda i, k: (i, 0, 0))

        kernel = functools.partial(
            _dice_partial_kernel,
            valid_rows=rows, block_rows=block_rows, num_k=num_k)

        out_pt, out_s = pl.pallas_call(
            kernel,
            out_shape=(
                jax.ShapeDtypeStruct((n_split, _ACC_ROWS, _LANES), jnp.float32),
                jax.ShapeDtypeStruct((n_split, _ACC_ROWS, _LANES), jnp.float32),
            ),
            grid_spec=pltpu.PrefetchScalarGridSpec(
                num_scalar_prefetch=0,
                grid=(n_split, num_k),
                in_specs=[in_blk_x, in_blk_t],
                out_specs=(out_blk, out_blk),
            ),
            compiler_params=pltpu.CompilerParams(
                dimension_semantics=("parallel", "arbitrary"),
                vmem_limit_bytes=32 * 1024 * 1024),
        )(x2, t2)

        # Tiny final combine (cross-lane reduce deferred out of the kernel).
        intersection = intersection + jnp.sum(out_pt)
        total = total + jnp.sum(out_s)

    if n_rem > 0:
        # Ragged tail (< 128 elements): plain JAX, avoids any full-array pad.
        xr = x[n_main:].astype(jnp.float32)
        tr = t[n_main:].astype(jnp.float32)
        pr = jax.nn.sigmoid(xr)
        intersection = intersection + jnp.sum(pr * tr)
        total = total + jnp.sum(pr) + jnp.sum(tr)

    dice = (2.0 * intersection + smooth) / (total + smooth)
    return 1.0 - dice


def _dice_loss_ref(inputs, targets, smooth=1.0):
    p = jax.nn.sigmoid(inputs.astype(jnp.float32)).ravel()
    t = targets.astype(jnp.float32).ravel()
    inter = jnp.sum(p * t)
    dice = (2.0 * inter + smooth) / (jnp.sum(p) + jnp.sum(t) + smooth)
    return 1.0 - dice


if __name__ == "__main__":
    key = jax.random.PRNGKey(0)
    k1, k2, k3, k4, k5, k6 = jax.random.split(key, 6)

    # 1) Small NCHW logits and binary targets (single-block path, row padding).
    x = jax.random.normal(k1, (2, 4, 16, 16), dtype=jnp.float32) * 2.0
    tgt = (jax.random.uniform(k2, (2, 4, 16, 16)) > 0.5).astype(jnp.float32)
    loss = jax.block_until_ready(dice_loss(x, tgt, smooth=1.0))
    ref = _dice_loss_ref(x, tgt, smooth=1.0)
    assert jnp.allclose(loss, ref, atol=1e-5, rtol=1e-5), (loss, ref)

    # 2) Larger input, 128-divisible: 2-way core split, no wrapper copies.
    xb = jax.random.normal(k3, (2, 1, 512, 640), dtype=jnp.float32)
    tb = (jax.random.uniform(k4, (2, 1, 512, 640)) > 0.5).astype(jnp.float32)
    loss_b = jax.block_until_ready(dice_loss(xb, tb, smooth=1.0))
    ref_b = _dice_loss_ref(xb, tb, smooth=1.0)
    assert jnp.allclose(loss_b, ref_b, atol=2e-4, rtol=2e-4), (loss_b, ref_b)

    # 3) Ragged size + int8 targets: masked partial boundary block, JAX tail,
    #    narrow-dtype target stream.
    xc = jax.random.normal(k5, (1, 1, 300, 301), dtype=jnp.float32)
    tc = (jax.random.uniform(k6, (1, 1, 300, 301)) > 0.5).astype(jnp.int8)
    loss_c = jax.block_until_ready(dice_loss(xc, tc, smooth=1.0))
    ref_c = _dice_loss_ref(xc, tc, smooth=1.0)
    assert jnp.allclose(loss_c, ref_c, atol=2e-4, rtol=2e-4), (loss_c, ref_c)

    print("KERNEL_OK")
</pallas_src>

<mosaic_0001>
module attributes {stable_mosaic.version = 11 : i64} {
  func.func @_dice_partial_kernel(%arg0: i32, %arg1: i32, %arg2: memref<32x128xf32, #tpu.memory_space<vmem>>, %arg3: memref<32x128xf32, #tpu.memory_space<vmem>>, %arg4: memref<1x32x128xf32, #tpu.memory_space<vmem>>, %arg5: memref<1x32x128xf32, #tpu.memory_space<vmem>>) attributes {dimension_semantics = [#tpu.dimension_semantics<parallel>, #tpu.dimension_semantics<arbitrary>], iteration_bounds = array<i64: 1, 1>, scalar_prefetch = 0 : i64, scratch_operands = 0 : i64, tpu.core_type = #tpu.core_type<tc>, window_params = [{transform_indices = @transform_0, window_bounds = array<i64: 32, 128>}, {transform_indices = @transform_1, window_bounds = array<i64: 32, 128>}, {transform_indices = @transform_2, window_bounds = array<i64: 1, 32, 128>}, {transform_indices = @transform_3, window_bounds = array<i64: 1, 32, 128>}]} {
    %c0_i32 = arith.constant 0 : i32
    %0 = arith.cmpi eq, %arg1, %c0_i32 : i32
    %1 = arith.extui %0 : i1 to i32
    %c0_i32_0 = arith.constant 0 : i32
    %2 = arith.cmpi ne, %1, %c0_i32_0 : i32
    scf.if %2 {
      %cst_20 = arith.constant 0.000000e+00 : f32
      %35 = vector.broadcast %cst_20 : f32 to vector<1x32x128xf32>
      %c0_21 = arith.constant 0 : index
      %c0_22 = arith.constant 0 : index
      %c0_23 = arith.constant 0 : index
      %36 = vector.load %arg4[%c0_21, %c0_22, %c0_23] : memref<1x32x128xf32, #tpu.memory_space<vmem>>, vector<1x32x128xf32>
      tpu.vector_store %arg4[%c0_21, %c0_22, %c0_23], %35 {strides = array<i32>} : memref<1x32x128xf32, #tpu.memory_space<vmem>>, vector<1x32x128xf32>,
      %cst_24 = arith.constant 0.000000e+00 : f32
      %37 = vector.broadcast %cst_24 : f32 to vector<1x32x128xf32>
      %c0_25 = arith.constant 0 : index
      %c0_26 = arith.constant 0 : index
      %c0_27 = arith.constant 0 : index
      %38 = vector.load %arg5[%c0_25, %c0_26, %c0_27] : memref<1x32x128xf32, #tpu.memory_space<vmem>>, vector<1x32x128xf32>
      tpu.vector_store %arg5[%c0_25, %c0_26, %c0_27], %37 {strides = array<i32>} : memref<1x32x128xf32, #tpu.memory_space<vmem>>, vector<1x32x128xf32>,
    } else {
    }
    %c1_i32 = arith.constant 1 : i32
    %3 = arith.muli %arg0, %c1_i32 : i32
    %4 = arith.addi %3, %arg1 : i32
    %c32_i32 = arith.constant 32 : i32
    %5 = arith.muli %4, %c32_i32 : i32
    %6 = tpu.iota {dimensions = array<i32: 0>} : vector<32x128xi32>
    %c16_i32 = arith.constant 16 : i32
    %7 = arith.subi %c16_i32, %5 : i32
    %8 = vector.broadcast %7 : i32 to vector<32x128xi32>
    %9 = arith.cmpi slt, %6, %8 : vector<32x128xi32>
    %c0 = arith.constant 0 : index
    %c0_1 = arith.constant 0 : index
    %10 = vector.load %arg2[%c0, %c0_1] : memref<32x128xf32, #tpu.memory_space<vmem>>, vector<32x128xf32>
    %c0_2 = arith.constant 0 : index
    %c0_3 = arith.constant 0 : index
    %11 = vector.load %arg3[%c0_2, %c0_3] : memref<32x128xf32, #tpu.memory_space<vmem>>, vector<32x128xf32>
    %12 = arith.negf %10 : vector<32x128xf32>
    %13 = math.exp %12 : vector<32x128xf32>
    %cst = arith.constant 1.000000e+00 : f32
    %14 = vector.broadcast %cst : f32 to vector<32x128xf32>
    %15 = arith.addf %14, %13 : vector<32x128xf32>
    %16 = arith.divf %14, %15 : vector<32x128xf32>
    %cst_4 = arith.constant 0.000000e+00 : f32
    %17 = vector.broadcast %cst_4 : f32 to vector<32x128xf32>
    %18 = arith.select %9, %16, %17 : vector<32x128xi1>, vector<32x128xf32>
    %cst_5 = arith.constant 0.000000e+00 : f32
    %19 = vector.broadcast %cst_5 : f32 to vector<32x128xf32>
    %20 = arith.select %9, %11, %19 : vector<32x128xi1>, vector<32x128xf32>
    %21 = arith.mulf %18, %20 : vector<32x128xf32>
    %22 = vector.shape_cast %21 : vector<32x128xf32> to vector<1x32x128xf32>
    %cst_6 = arith.constant dense<0.000000e+00> : vector<32x128xf32>
    %23 = vector.multi_reduction <add>, %22, %cst_6 [0] : vector<1x32x128xf32> to vector<32x128xf32>
    %24 = arith.addf %18, %20 : vector<32x128xf32>
    %25 = vector.shape_cast %24 : vector<32x128xf32> to vector<1x32x128xf32>
    %cst_7 = arith.constant dense<0.000000e+00> : vector<32x128xf32>
    %26 = vector.multi_reduction <add>, %25, %cst_7 [0] : vector<1x32x128xf32> to vector<32x128xf32>
    %c0_8 = arith.constant 0 : index
    %c0_9 = arith.constant 0 : index
    %c0_10 = arith.constant 0 : index
    %27 = vector.load %arg4[%c0_8, %c0_9, %c0_10] : memref<1x32x128xf32, #tpu.memory_space<vmem>>, vector<1x32x128xf32>
    %28 = vector.shape_cast %23 : vector<32x128xf32> to vector<1x32x128xf32>
    %29 = arith.addf %27, %28 : vector<1x32x128xf32>
    %c0_11 = arith.constant 0 : index
    %c0_12 = arith.constant 0 : index
    %c0_13 = arith.constant 0 : index
    %30 = vector.load %arg4[%c0_11, %c0_12, %c0_13] : memref<1x32x128xf32, #tpu.memory_space<vmem>>, vector<1x32x128xf32>
    tpu.vector_store %arg4[%c0_11, %c0_12, %c0_13], %29 {strides = array<i32>} : memref<1x32x128xf32, #tpu.memory_space<vmem>>, vector<1x32x128xf32>,
    %c0_14 = arith.constant 0 : index
    %c0_15 = arith.constant 0 : index
    %c0_16 = arith.constant 0 : index
    %31 = vector.load %arg5[%c0_14, %c0_15, %c0_16] : memref<1x32x128xf32, #tpu.memory_space<vmem>>, vector<1x32x128xf32>
    %32 = vector.shape_cast %26 : vector<32x128xf32> to vector<1x32x128xf32>
    %33 = arith.addf %31, %32 : vector<1x32x128xf32>
    %c0_17 = arith.constant 0 : index
    %c0_18 = arith.constant 0 : index
    %c0_19 = arith.constant 0 : index
    %34 = vector.load %arg5[%c0_17, %c0_18, %c0_19] : memref<1x32x128xf32, #tpu.memory_space<vmem>>, vector<1x32x128xf32>
    tpu.vector_store %arg5[%c0_17, %c0_18, %c0_19], %33 {strides = array<i32>} : memref<1x32x128xf32, #tpu.memory_space<vmem>>, vector<1x32x128xf32>,
    return
  }
  func.func @transform_0(%arg0: i32, %arg1: i32) -> (i32, i32) {
    %c1_i32 = arith.constant 1 : i32
    %0 = arith.muli %arg0, %c1_i32 : i32
    %1 = arith.addi %0, %arg1 : i32
    %c0_i32 = arith.constant 0 : i32
    %2 = arith.minsi %1, %c0_i32 : i32
    %c0_i32_0 = arith.constant 0 : i32
    %c0_i32_1 = arith.constant 0 : i32
    return %2, %c0_i32_0 : i32, i32
  }
  func.func @transform_1(%arg0: i32, %arg1: i32) -> (i32, i32) {
    %c1_i32 = arith.constant 1 : i32
    %0 = arith.muli %arg0, %c1_i32 : i32
    %1 = arith.addi %0, %arg1 : i32
    %c0_i32 = arith.constant 0 : i32
    %2 = arith.minsi %1, %c0_i32 : i32
    %c0_i32_0 = arith.constant 0 : i32
    %c0_i32_1 = arith.constant 0 : i32
    return %2, %c0_i32_0 : i32, i32
  }
  func.func @transform_2(%arg0: i32, %arg1: i32) -> (i32, i32, i32) {
    %c0_i32 = arith.constant 0 : i32
    %c0_i32_0 = arith.constant 0 : i32
    %c0_i32_1 = arith.constant 0 : i32
    return %arg0, %c0_i32, %c0_i32_0 : i32, i32, i32
  }
  func.func @transform_3(%arg0: i32, %arg1: i32) -> (i32, i32, i32) {
    %c0_i32 = arith.constant 0 : i32
    %c0_i32_0 = arith.constant 0 : i32
    %c0_i32_1 = arith.constant 0 : i32
    return %arg0, %c0_i32, %c0_i32_0 : i32, i32, i32
  }
}

</mosaic_0001>

<bundles_post_ra>
// kernel: tpu_custom_call.1
= control target key start
LH: loop header
LB: loop body
LE: loop exit
PB: predicated region body
PF: predicated region fallthrough
CT: control target
= control target key end

     0   :  { %9 = vsyncpa [#allocation3], 0  ;;  %s415_s0 = inlined_call_operand.hbm [shape: f32[32,128], index: 0, kind: input, shape index: {}]   ;;  %s416_s1 = inlined_call_operand.hbm [shape: f32[32,128], index: 1, kind: input, shape index: {}]   ;;  %s417_s2 = inlined_call_operand.hbm [shape: f32[1,32,128], index: 2, kind: output, shape index: {0}]   ;;  %s418_s3 = inlined_call_operand.hbm [shape: f32[1,32,128], index: 3, kind: output, shape index: {1}]  }
   0x1   :  { %10 = vsyncpa [#allocation6], 0 }
   0x2   :  { %11 = vsyncpa [#allocation4], 0 }
   0x3   :  { %12 = vsyncpa [#allocation9], 0  ;;  %s321_s12 = smov [#allocation2]   ;;  %s225_s16 = scalar_lea.hbm %s415_s0, 512 }
   0x4   :  { %s24_s13 = sshll.u32 %s321_s12, 4  ;;  %p226_p0 = scmp.ne.s32.totalorder %s415_s0, %s225_s16  ;;  %s25_s13 = int_to_ptr.vmem [resolvable:$true] %s24_s13 }
   0x5   :  { %p229_p1 = scmp.lt.u32.totalorder %s225_s16, %s415_s0 }
   0x7   :  { %p231_p2 = pnand %p229_p1, %p226_p0 }
   0x9   :  { %234 = shalt.err (!%p231_p2)
}
   0xa   :  { %s235_s21 = scalar_lea.vmem %s25_s13, 512  ;;  %p240_p4 = scmp.lt.s32.totalorder %s25_s13, %s25_s13 }
   0xb   :  { %p236_p3 = scmp.ne.s32.totalorder %s25_s13, %s235_s21  ;;  %p241_p5 = scmp.lt.s32.totalorder %s235_s21, %s235_s21 }
   0xd   :  { %p242_p6 = por %p241_p5, %p240_p4 }
   0xf   :  { %p243_p7 = pnand %p242_p6, %p236_p3 }
  0x11   :  { %246 = shalt.err (!%p243_p7)
}
  0x12   :  { %s322_s22 = smov 128   ;;  %s323_s23 = smov 8  }
  0x13   :  { %30 = dma.hbm_to_vmem [thread:$0]  %s415_s0, 512, %s25_s13, [#allocation3], %s322_s22, %s322_s22, %s323_s23  }
  0x14   :  { %s324_s26 = smov [#allocation5]   ;;  %s247_s30 = scalar_lea.hbm %s416_s1, 512 }
  0x15   :  { %s42_s27 = sshll.u32 %s324_s26, 4  ;;  %p248_p8 = scmp.ne.s32.totalorder %s416_s1, %s247_s30  ;;  %s43_s27 = int_to_ptr.vmem [resolvable:$true] %s42_s27 }
  0x16   :  { %p251_p9 = scmp.lt.u32.totalorder %s247_s30, %s416_s1 }
  0x18   :  { %p253_p10 = pnand %p251_p9, %p248_p8 }
  0x1a   :  { %256 = shalt.err (!%p253_p10)
}
  0x1b   :  { %s257_s8 = scalar_lea.vmem %s43_s27, 512  ;;  %p262_p12 = scmp.lt.s32.totalorder %s43_s27, %s43_s27 }
  0x1c   :  { %p258_p11 = scmp.ne.s32.totalorder %s43_s27, %s257_s8  ;;  %p263_p13 = scmp.lt.s32.totalorder %s257_s8, %s257_s8 }
  0x1e   :  { %p264_p0 = por %p263_p13, %p262_p12 }
  0x20   :  { %p265_p1 = pnand %p264_p0, %p258_p11 }
  0x22   :  { %268 = shalt.err (!%p265_p1)
}
  0x23   :  { %48 = dma.hbm_to_vmem [thread:$0]  %s416_s1, 512, %s43_s27, [#allocation6], %s322_s22, %s322_s22, %s323_s23  }
  0x24   :  { %313 = dma.done.wait [#allocation3], 512  }
  0x25   :  { %314 = vsyncadd [#allocation3], 4294966784 }
  0x26   :  { %315 = dma.done.wait [#allocation6], 512  }
  0x27   :  { %316 = vsyncadd [#allocation6], 4294966784  ;;  %v325_v0 = vmov 0.0   ;;  %v88_v1 = vld [vmem:[#allocation2] sm:$0xff]  ;;  %v89_v2 = vld [vmem:[#allocation2 + $0x8] sm:$0xff]  ;;  %s326_s1 = smov [#allocation7]  }
  0x28   :  { %154 = vst [vmem:[#allocation7 + $0x10] sm:$0xff] %v325_v0  ;;  %155 = vst [vmem:[#allocation7 + $0x18] sm:$0xff] %v325_v0  ;;  %v206_v3 = vmul.f32 -1.442695, %v88_v1  ;;  %v207_v4 = vmul.f32 -1.442695, %v89_v2 }
  0x29   :  { %166 = vst [vmem:[#allocation8 + $0x10] sm:$0xff] %v325_v0  ;;  %167 = vst [vmem:[#allocation8 + $0x18] sm:$0xff] %v325_v0  ;;  %v92_v9 = vld [vmem:[#allocation5] sm:$0xff]  ;;  %v93_v10 = vld [vmem:[#allocation5 + $0x8] sm:$0xff]  ;;  %s173_s10 = sshll.u32 %s326_s1, 4  ;;  %s327_s11 = smov [#allocation8]   ;;  %s174_s10 = int_to_ptr.vmem [resolvable:$true] %s173_s10 }
  0x2a   :  { %217 = vpow2.f32 %v206_v3  ;;  %s185_s12 = sshll.u32 %s327_s11, 4  ;;  %s269_s13 = scalar_lea.vmem %s174_s10, 512  ;;  %s378_s12 = int_to_ptr.vmem [resolvable:$true] %s185_s12 }
  0x2b   :  { %219 = vpow2.f32 %v207_v4  ;;  %p270_p2 = scmp.ne.s32.totalorder %s174_s10, %s269_s13  ;;  %p274_p3 = scmp.lt.s32.totalorder %s174_s10, %s174_s10 }
  0x2c   :  { %p275_p4 = scmp.lt.s32.totalorder %s269_s13, %s269_s13 }
  0x2e   :  { %p276_p5 = por %p275_p4, %p274_p3 }
  0x30   :  { %p277_p6 = pnand %p276_p5, %p270_p2 }
  0x34   :  { %v218_v5 = vpop.eup %217 }
  0x35   :  { %v220_v6 = vpop.eup %219  ;;  %v108_v7 = vadd.f32 1.0, %v218_v5 }
  0x36   :  { %v109_v8 = vadd.f32 1.0, %v220_v6 }
  0x37   :  { %221 = vrcp.f32 %v108_v7 }
  0x38   :  { %223 = vrcp.f32 %v109_v8 }
  0x41   :  { %v222_v11 = vpop.eup %221 }
  0x42   :  { %v224_v12 = vpop.eup %223  ;;  %v128_v13 = vmul.f32 %v222_v11, %v92_v9  ;;  %v136_v14 = vadd.f32 %v222_v11, %v92_v9 }
  0x43   :  { %v129_v15 = vmul.f32 %v224_v12, %v93_v10  ;;  %v137_v16 = vadd.f32 %v224_v12, %v93_v10 }
  0x44   :  { %152 = vst [vmem:[#allocation7] sm:$0xff] %v128_v13  ;;  %164 = vst [vmem:[#allocation8] sm:$0xff] %v136_v14 }
  0x45   :  { %153 = vst [vmem:[#allocation7 + $0x8] sm:$0xff] %v129_v15  ;;  %165 = vst [vmem:[#allocation8 + $0x8] sm:$0xff] %v137_v16 }
  0x46   :  { %280 = shalt.err (!%p277_p6)
}
  0x47   :  { %s281_s16 = scalar_lea.hbm %s417_s2, 512 }
  0x48   :  { %p282_p7 = scmp.ne.s32.totalorder %s417_s2, %s281_s16  ;;  %p285_p8 = scmp.lt.u32.totalorder %s281_s16, %s417_s2 }
  0x4a   :  { %p287_p9 = pnand %p285_p8, %p282_p7 }
  0x4c   :  { %290 = shalt.err (!%p287_p9)
}
  0x4d   :  { %179 = dma.vmem_to_hbm [thread:$0]  %s174_s10, 512, %s417_s2, [#allocation4], %s322_s22, %s322_s22, %s323_s23  }
  0x4e   :  { %s291_s25 = scalar_lea.vmem %s378_s12, 512  ;;  %p296_p11 = scmp.lt.s32.totalorder %s378_s12, %s378_s12 }
  0x4f   :  { %p292_p10 = scmp.ne.s32.totalorder %s378_s12, %s291_s25  ;;  %p297_p12 = scmp.lt.s32.totalorder %s291_s25, %s291_s25 }
  0x51   :  { %p298_p13 = por %p297_p12, %p296_p11 }
  0x53   :  { %p299_p0 = pnand %p298_p13, %p292_p10 }
  0x55   :  { %302 = shalt.err (!%p299_p0)
}
  0x56   :  { %s303_s28 = scalar_lea.hbm %s418_s3, 512 }
  0x57   :  { %p304_p1 = scmp.ne.s32.totalorder %s418_s3, %s303_s28  ;;  %p307_p2 = scmp.lt.u32.totalorder %s303_s28, %s418_s3 }
  0x59   :  { %p309_p3 = pnand %p307_p2, %p304_p1 }
  0x5b   :  { %312 = shalt.err (!%p309_p3)
}
  0x5c   :  { %191 = dma.vmem_to_hbm [thread:$0]  %s378_s12, 512, %s418_s3, [#allocation9], %s322_s22, %s322_s22, %s323_s23  }
  0x5d   :  { %317 = dma.done.wait [#allocation4], 512  }
  0x5e   :  { %318 = vsyncadd [#allocation4], 4294966784 }
  0x5f   :  { %319 = dma.done.wait [#allocation9], 512  }
  0x60   :  { %320 = vsyncadd [#allocation9], 4294966784 }
  0x61   :  { %198 = vsyncpa [#allocation3], 1 }
  0x62   :  { %199 = vsyncpa [#allocation6], 1 }
  0x63   :  { %200 = vsyncpa [#allocation4], 1 }
  0x64   :  { %201 = vsyncpa [#allocation9], 1 }

</bundles_post_ra>
